<compile_context>
chip_gen: v6e
topology: v6e:2x2x1
jax: 0.10.0
libtpu: 0.0.40
codegen_flags: <defaults>
</compile_context>

<pallas_src>
import functools

import jax
import jax.numpy as jnp
from jax.experimental import pallas as pl
from jax.experimental.pallas import tpu as pltpu


# ----------------------------------------------------------------------------
# Pallas kernel: per-row-tile masked cross-entropy partial sums.
# ----------------------------------------------------------------------------
def _ce_partial_kernel(x_ref, t_ref, out_ref, *, n_rows, tile_n, ignore_index):
    i = pl.program_id(0)

    x = x_ref[...]                              # (tile_n, C) in NATIVE dtype
    t = t_ref[...]                              # (tile_n, 1) int32
    tn, c = x.shape
    zero = jnp.zeros((), x.dtype)

    # Row max and one-hot target gather in the native dtype (bf16 packs
    # 2 elem/lane on v6e/v7x; on v5e this lowers through f32 — still correct).
    # NOTE: out-of-range / negative targets match no column -> picked = 0, so
    # that row's loss silently becomes lse (PyTorch would error); only the QA
    # path clips its targets.
    m = jnp.max(x, axis=-1, keepdims=True)
    col = jax.lax.broadcasted_iota(jnp.int32, (tn, c), 1)
    picked = jnp.sum(jnp.where(col == t, x, zero),
                     axis=-1, keepdims=True).astype(jnp.float32)

    # Only (x - m) is widened to f32 (it feeds exp); exp-sum accumulates in f32.
    e = jnp.exp((x - m).astype(jnp.float32))
    lse = m.astype(jnp.float32) + jnp.log(jnp.sum(e, axis=-1, keepdims=True))
    per_row = lse - picked                      # (tile_n, 1) f32

    # Tail rows of the last (ragged) tile hold undefined data: mask them via
    # the global row index — no wrapper-side padded copy of the logits slab.
    row = jax.lax.broadcasted_iota(jnp.int32, (tn, 1), 0) + i * tile_n
    valid = row < n_rows
    if ignore_index is not None:
        valid = jnp.logical_and(valid, t != ignore_index)
    validf = valid.astype(jnp.float32)

    # Select (not multiply): undefined tail data may be inf/NaN.
    masked = jnp.where(valid, per_row, 0.0)

    # Single packed, lane-dense per-tile partial output (unmasked 128-wide
    # store): lane 0 = loss sum, lane 1 = valid-row count.  Final cross-tile
    # reduction happens in plain JAX, so there is no serial accumulator and
    # the row-grid axis can be "parallel" (megacore on v7x).
    lane = jax.lax.broadcasted_iota(jnp.int32, (1, 1, 128), 2)
    out_ref[...] = jnp.where(lane == 0, jnp.sum(masked),
                             jnp.where(lane == 1, jnp.sum(validf), 0.0))


# ----------------------------------------------------------------------------
# Tile / VMEM sizing.
# ----------------------------------------------------------------------------
def _tpu_vmem_budget():
    """(per-buffer byte budget, scoped vmem limit) sized per TPU generation.

    v5e/v6e have 128 MiB VMEM -> ~10 MiB per pipelined logits buffer, 96 MiB
    scoped limit.  v7x has only 64 MiB per TensorCore (and in-kernel f32/exp
    temps cost ~3-4x block bytes), so the conservative default of ~5 MiB /
    48 MiB is used there and whenever detection is unavailable.
    """
    budget, limit = 5 * 1024 * 1024, 48 * 1024 * 1024
    try:
        info_fn = getattr(pltpu, "get_tpu_info", None)
        if info_fn is not None:
            cap = getattr(info_fn(), "vmem_capacity_bytes", None)
            if cap is not None and cap >= 100 * 1024 * 1024:
                budget, limit = 10 * 1024 * 1024, 96 * 1024 * 1024
    except Exception:
        pass
    return budget, limit


def _choose_tile_n(n, c, itemsize, budget):
    """Largest aligned row tile whose logits block stays under `budget` bytes."""
    # Sublane alignment: 8 rows for 32-bit dtypes, 16 for bf16, 32 for 8-bit.
    align = 8 * max(1, 4 // max(1, itemsize))
    rows = budget // max(1, c * itemsize)
    rows = max(align, min(4096, (rows // align) * align))
    if n <= rows:
        if n >= 2 * align:
            # Keep >= 2 row tiles so the "parallel" axis can still shard
            # across both TensorCores on v7x (harmless no-op on v5e/v6e).
            half = -(-(-(-n // 2)) // align) * align   # align*ceil(ceil(n/2)/align)
            return min(half, rows)
        # Single block covering the full row extent (block == full dim is a
        # legal layout even if n is not a multiple of the alignment).
        return max(1, n)
    return rows


# ----------------------------------------------------------------------------
# Wrapper.
# ----------------------------------------------------------------------------
def cross_entropy_pallas(logits, targets, ignore_index=None, tile_rows=None):
    """Mean cross-entropy over rows of (N, C) logits with int targets (N,).

    Matches torch.nn.CrossEntropyLoss(reduction='mean', ignore_index=...).
    Returns NaN if every row is ignored (same as PyTorch's 'mean' reduction).
    The valid-row count accumulates in f32 -> exact up to ~2^24 valid rows.
    """
    targets = targets.astype(jnp.int32)
    n, c = logits.shape
    itemsize = jnp.dtype(logits.dtype).itemsize

    budget, vmem_limit = _tpu_vmem_budget()
    tile_n = tile_rows if tile_rows is not None else _choose_tile_n(
        n, c, itemsize, budget)
    tile_n = min(tile_n, n)
    num_tiles = pl.cdiv(n, tile_n)

    t2d = targets.reshape(n, 1)

    kernel = functools.partial(_ce_partial_kernel, n_rows=n, tile_n=tile_n,
                               ignore_index=ignore_index)

    partials = pl.pallas_call(
        kernel,
        out_shape=jax.ShapeDtypeStruct((num_tiles, 1, 128), jnp.float32),
        grid_spec=pltpu.PrefetchScalarGridSpec(
            num_scalar_prefetch=0,
            grid=(num_tiles,),
            in_specs=[
                pl.BlockSpec((tile_n, c), lambda i: (i, 0)),
                pl.BlockSpec((tile_n, 1), lambda i: (i, 0)),
            ],
            out_specs=pl.BlockSpec((1, 1, 128), lambda i: (i, 0, 0)),
        ),
        compiler_params=pltpu.CompilerParams(
            dimension_semantics=("parallel",),       # independent row tiles
            vmem_limit_bytes=vmem_limit,
        ),
    )(logits, t2d)

    loss_sum = jnp.sum(partials[:, 0, 0])
    valid_cnt = jnp.sum(partials[:, 0, 1])
    return loss_sum / valid_cnt


# ----------------------------------------------------------------------------
# Task-specific loss (Pallas CE under the hood) — used as the base loss.
# ----------------------------------------------------------------------------
class TaskSpecificLossPallas:
    def __init__(self, task_name: str, weight: float = 1.0):
        self.task_name = task_name
        self.weight = weight
        if task_name in ("summarization", "code_generation", "translation"):
            self.ignore_index = 1
        else:
            self.ignore_index = None

    def __call__(self, predictions, targets):
        if self.task_name == "qa":
            if predictions.ndim == 3:
                b, s, _ = predictions.shape
                # One transposed copy (B,S,2)->(2,B,S)->(2B,S) instead of two
                # strided head slices + a concat: a single pass over the slab.
                stacked_logits = jnp.moveaxis(predictions, -1, 0).reshape(2 * b, s)
            else:
                start_logits = predictions[:, 0:1]             # (B, 1)
                end_logits = predictions[:, 1:2]               # (B, 1)
                s = 1
                stacked_logits = jnp.concatenate([start_logits, end_logits], 0)
            start_t = jnp.clip(targets[:, 0], 0, s - 1)
            end_t = jnp.clip(targets[:, 1], 0, s - 1)
            stacked_t = jnp.concatenate([start_t, end_t], axis=0)
            # Fused single kernel launch: mean over the stacked 2B rows equals
            # (mean_start + mean_end) / 2 since both heads have B valid rows.
            return self.weight * cross_entropy_pallas(stacked_logits, stacked_t)
        elif self.task_name in ("summarization", "code_generation", "translation"):
            batch_size, seq_len, vocab_size = predictions.shape
            target_seq_len = targets.shape[1]
            if seq_len != target_seq_len:
                min_len = min(seq_len, target_seq_len)
                predictions = predictions[:, :min_len, :]
                targets = targets[:, :min_len]
            pred_flat = predictions.reshape(-1, vocab_size)
            tgt_flat = targets.reshape(-1)
            loss = cross_entropy_pallas(pred_flat, tgt_flat,
                                        ignore_index=self.ignore_index)
            return self.weight * loss
        else:
            # e.g. 'sentiment' or other classification: (B, C) vs (B,)
            return self.weight * cross_entropy_pallas(predictions, targets)


class MultiTaskLossPallas:
    """Base loss returning a dict of per-task losses (plus 'total_loss')."""

    def __init__(self, task_weights):
        self.task_losses = {name: TaskSpecificLossPallas(name, w)
                            for name, w in task_weights.items()}

    def __call__(self, predictions, targets):
        losses = {}
        for name, loss_fn in self.task_losses.items():
            losses[f"{name}_loss"] = loss_fn(predictions[name], targets[name])
        losses["total_loss"] = sum(losses.values())
        return losses


# ----------------------------------------------------------------------------
# CurriculumLoss forward (host-side scalar glue, matches the PyTorch module).
# ----------------------------------------------------------------------------
class CurriculumLossPallas:
    def __init__(self, base_loss, curriculum_schedule):
        self.base_loss = base_loss
        self.curriculum_schedule = curriculum_schedule
        self.current_step = 0

    def __call__(self, *args, **kwargs):
        losses = dict(self.base_loss(*args, **kwargs))
        curriculum_weight = self._get_curriculum_weight()
        for key in list(losses.keys()):
            if key != "total_loss":
                losses[key] = losses[key] * curriculum_weight
        total_loss = sum(loss for key, loss in losses.items()
                         if key != "total_loss")
        losses["total_loss"] = total_loss
        return losses

    def _get_curriculum_weight(self):
        max_steps = max(self.curriculum_schedule.keys())
        progress = min(self.current_step / max_steps, 1.0)  # noqa: F841 (matches reference)
        for step, weight in sorted(self.curriculum_schedule.items()):
            if self.current_step <= step:
                return weight
        return list(self.curriculum_schedule.values())[-1]

    def step(self):
        self.current_step += 1


# ----------------------------------------------------------------------------
# Pure-JAX reference for sanity checking.
# ----------------------------------------------------------------------------
def _ce_ref(logits, targets, ignore_index=None):
    logits = logits.astype(jnp.float32)
    lse = jax.nn.logsumexp(logits, axis=-1)
    picked = jnp.take_along_axis(
        logits, targets[:, None].astype(jnp.int32), axis=-1)[:, 0]
    loss = lse - picked
    valid = jnp.ones_like(loss) if ignore_index is None else (
        (targets != ignore_index).astype(jnp.float32))
    return jnp.sum(loss * valid) / jnp.sum(valid)


if __name__ == "__main__":
    key = jax.random.PRNGKey(0)
    k1, k2, k3, k4, k5, k6, k7, k8 = jax.random.split(key, 8)

    # --- per-task inputs -----------------------------------------------------
    preds_sum = jax.random.normal(k1, (2, 8, 32), jnp.float32)     # (B,S,V)
    tgts_sum = jax.random.randint(k2, (2, 8), 0, 32, jnp.int32)

    preds_qa = jax.random.normal(k3, (2, 8, 2), jnp.float32)       # (B,S,2)
    tgts_qa = jax.random.randint(k4, (2, 2), 0, 8, jnp.int32)

    preds_sent = jax.random.normal(k5, (2, 4), jnp.float32)        # (B,C)
    tgts_sent = jax.random.randint(k6, (2,), 0, 4, jnp.int32)

    predictions = {"summarization": preds_sum, "qa": preds_qa,
                   "sentiment": preds_sent}
    targets = {"summarization": tgts_sum, "qa": tgts_qa,
               "sentiment": tgts_sent}

    base_loss = MultiTaskLossPallas(
        {"summarization": 1.0, "qa": 0.5, "sentiment": 2.0})
    curriculum = CurriculumLossPallas(base_loss, {0: 0.5, 100: 1.0})

    # --- forward at curriculum step 0 (weight = 0.5) -------------------------
    losses0 = curriculum(predictions, targets)
    jax.block_until_ready(list(losses0.values()))

    # --- reference -----------------------------------------------------------
    ref_sum_task = 1.0 * _ce_ref(preds_sum.reshape(-1, 32),
                                 tgts_sum.reshape(-1), ignore_index=1)
    ref_qa_task = 0.5 * (_ce_ref(preds_qa[:, :, 0], jnp.clip(tgts_qa[:, 0], 0, 7))
                         + _ce_ref(preds_qa[:, :, 1], jnp.clip(tgts_qa[:, 1], 0, 7))) / 2.0
    ref_sent_task = 2.0 * _ce_ref(preds_sent, tgts_sent)

    w0 = 0.5
    assert jnp.allclose(losses0["summarization_loss"], w0 * ref_sum_task,
                        atol=1e-5, rtol=1e-5)
    assert jnp.allclose(losses0["qa_loss"], w0 * ref_qa_task,
                        atol=1e-5, rtol=1e-5)
    assert jnp.allclose(losses0["sentiment_loss"], w0 * ref_sent_task,
                        atol=1e-5, rtol=1e-5)
    ref_total0 = w0 * (ref_sum_task + ref_qa_task + ref_sent_task)
    assert jnp.allclose(losses0["total_loss"], ref_total0, atol=1e-4, rtol=1e-5)

    # --- advance curriculum, forward again (weight = 1.0) --------------------
    curriculum.step()
    curriculum.step()
    losses2 = curriculum(predictions, targets)
    jax.block_until_ready(list(losses2.values()))
    ref_total2 = 1.0 * (ref_sum_task + ref_qa_task + ref_sent_task)
    assert jnp.allclose(losses2["total_loss"], ref_total2, atol=1e-4, rtol=1e-5)

    # --- ragged-tail path (tile smaller than N, partial last block) ----------
    x_odd = jax.random.normal(k7, (20, 32), jnp.float32)
    t_odd = jax.random.randint(k8, (20,), 0, 32, jnp.int32)
    loss_odd = cross_entropy_pallas(x_odd, t_odd, ignore_index=1, tile_rows=8)
    assert jnp.allclose(loss_odd, _ce_ref(x_odd, t_odd, ignore_index=1),
                        atol=1e-5, rtol=1e-5)
    # Auto tile choice (splits into >=2 tiles, ragged tail) must also match.
    loss_auto = cross_entropy_pallas(x_odd, t_odd, ignore_index=1)
    assert jnp.allclose(loss_auto, _ce_ref(x_odd, t_odd, ignore_index=1),
                        atol=1e-5, rtol=1e-5)

    # --- native bf16 streaming path (native-dtype max/gather in-kernel) ------
    x_bf = x_odd.astype(jnp.bfloat16)
    loss_bf = cross_entropy_pallas(x_bf, t_odd, ignore_index=1)
    ref_bf = _ce_ref(x_bf.astype(jnp.float32), t_odd, ignore_index=1)
    # bf16-native (x - m) before the f32 exp is slightly coarser than the ref.
    assert jnp.allclose(loss_bf, ref_bf, atol=5e-3, rtol=5e-3)

    jax.block_until_ready((loss_odd, loss_auto, loss_bf))
    print("KERNEL_OK")
</pallas_src>

<mosaic_0001>
module attributes {stable_mosaic.version = 11 : i64} {
  func.func @_ce_partial_kernel(%arg0: i32, %arg1: memref<8x32xf32, #tpu.memory_space<vmem>>, %arg2: memref<8x1xi32, #tpu.memory_space<vmem>>, %arg3: memref<1x1x128xf32, #tpu.memory_space<vmem>>) attributes {dimension_semantics = [#tpu.dimension_semantics<parallel>], iteration_bounds = array<i64: 2>, scalar_prefetch = 0 : i64, scratch_operands = 0 : i64, tpu.core_type = #tpu.core_type<tc>, window_params = [{transform_indices = @transform_0, window_bounds = array<i64: 8, 32>}, {transform_indices = @transform_1, window_bounds = array<i64: 8, 1>}, {transform_indices = @transform_2, window_bounds = array<i64: 1, 1, 128>}]} {
    %c0 = arith.constant 0 : index
    %c0_0 = arith.constant 0 : index
    %0 = vector.load %arg1[%c0, %c0_0] : memref<8x32xf32, #tpu.memory_space<vmem>>, vector<8x32xf32>
    %c0_1 = arith.constant 0 : index
    %c0_2 = arith.constant 0 : index
    %1 = vector.load %arg2[%c0_1, %c0_2] : memref<8x1xi32, #tpu.memory_space<vmem>>, vector<8x1xi32>
    %cst = arith.constant dense<0xFF800000> : vector<8xf32>
    %2 = vector.multi_reduction <maximumf>, %0, %cst [1] : vector<8x32xf32> to vector<8xf32>
    %3 = vector.shape_cast %2 : vector<8xf32> to vector<8x1xf32>
    %4 = tpu.iota {dimensions = array<i32: 1>} : vector<8x32xi32>
    %5 = vector.broadcast %1 : vector<8x1xi32> to vector<8x32xi32>
    %6 = arith.cmpi eq, %4, %5 : vector<8x32xi32>
    %cst_3 = arith.constant 0.000000e+00 : f32
    %7 = vector.broadcast %cst_3 : f32 to vector<8x32xf32>
    %8 = arith.select %6, %0, %7 : vector<8x32xi1>, vector<8x32xf32>
    %cst_4 = arith.constant dense<0.000000e+00> : vector<8xf32>
    %9 = vector.multi_reduction <add>, %8, %cst_4 [1] : vector<8x32xf32> to vector<8xf32>
    %10 = vector.shape_cast %9 : vector<8xf32> to vector<8x1xf32>
    %11 = vector.broadcast %3 : vector<8x1xf32> to vector<8x32xf32>
    %12 = arith.subf %0, %11 : vector<8x32xf32>
    %13 = math.exp %12 : vector<8x32xf32>
    %cst_5 = arith.constant dense<0.000000e+00> : vector<8xf32>
    %14 = vector.multi_reduction <add>, %13, %cst_5 [1] : vector<8x32xf32> to vector<8xf32>
    %15 = vector.shape_cast %14 : vector<8xf32> to vector<8x1xf32>
    %16 = math.log %15 : vector<8x1xf32>
    %17 = arith.addf %3, %16 : vector<8x1xf32>
    %18 = arith.subf %17, %10 : vector<8x1xf32>
    %19 = tpu.iota {dimensions = array<i32: 0>} : vector<8x1xi32>
    %c8_i32 = arith.constant 8 : i32
    %20 = arith.muli %arg0, %c8_i32 : i32
    %21 = vector.broadcast %20 : i32 to vector<8x1xi32>
    %22 = arith.addi %19, %21 : vector<8x1xi32>
    %c16_i32 = arith.constant 16 : i32
    %23 = vector.broadcast %c16_i32 : i32 to vector<8x1xi32>
    %24 = arith.cmpi slt, %22, %23 : vector<8x1xi32>
    %c1_i32 = arith.constant 1 : i32
    %25 = vector.broadcast %c1_i32 : i32 to vector<8x1xi32>
    %26 = arith.cmpi ne, %1, %25 : vector<8x1xi32>
    %27 = arith.andi %24, %26 : vector<8x1xi1>
    %28 = arith.extui %27 : vector<8x1xi1> to vector<8x1xi32>
    %29 = arith.sitofp %28 : vector<8x1xi32> to vector<8x1xf32>
    %cst_6 = arith.constant 0.000000e+00 : f32
    %30 = vector.broadcast %cst_6 : f32 to vector<8x1xf32>
    %31 = arith.select %27, %18, %30 : vector<8x1xi1>, vector<8x1xf32>
    %32 = tpu.iota {dimensions = array<i32: 2>} : vector<1x1x128xi32>
    %c0_i32 = arith.constant 0 : i32
    %33 = vector.broadcast %c0_i32 : i32 to vector<1x1x128xi32>
    %34 = arith.cmpi eq, %32, %33 : vector<1x1x128xi32>
    %35 = vector.shape_cast %31 : vector<8x1xf32> to vector<1x8x1xf32>
    %cst_7 = arith.constant dense<0.000000e+00> : vector<1xf32>
    %36 = vector.multi_reduction <add>, %35, %cst_7 [1, 2] : vector<1x8x1xf32> to vector<1xf32>
    %37 = vector.shape_cast %36 : vector<1xf32> to vector<1x1x1xf32>
    %38 = vector.extract %37[0, 0, 0] : f32 from vector<1x1x1xf32>
    %c1_i32_8 = arith.constant 1 : i32
    %39 = vector.broadcast %c1_i32_8 : i32 to vector<1x1x128xi32>
    %40 = arith.cmpi eq, %32, %39 : vector<1x1x128xi32>
    %41 = vector.shape_cast %29 : vector<8x1xf32> to vector<1x8x1xf32>
    %cst_9 = arith.constant dense<0.000000e+00> : vector<1xf32>
    %42 = vector.multi_reduction <add>, %41, %cst_9 [1, 2] : vector<1x8x1xf32> to vector<1xf32>
    %43 = vector.shape_cast %42 : vector<1xf32> to vector<1x1x1xf32>
    %44 = vector.extract %43[0, 0, 0] : f32 from vector<1x1x1xf32>
    %cst_10 = arith.constant 0.000000e+00 : f32
    %45 = vector.broadcast %44 : f32 to vector<1x1x128xf32>
    %46 = vector.broadcast %cst_10 : f32 to vector<1x1x128xf32>
    %47 = arith.select %40, %45, %46 : vector<1x1x128xi1>, vector<1x1x128xf32>
    %48 = vector.broadcast %38 : f32 to vector<1x1x128xf32>
    %49 = arith.select %34, %48, %47 : vector<1x1x128xi1>, vector<1x1x128xf32>
    %c0_11 = arith.constant 0 : index
    %c0_12 = arith.constant 0 : index
    %c0_13 = arith.constant 0 : index
    %50 = vector.load %arg3[%c0_11, %c0_12, %c0_13] : memref<1x1x128xf32, #tpu.memory_space<vmem>>, vector<1x1x128xf32>
    tpu.vector_store %arg3[%c0_11, %c0_12, %c0_13], %49 {strides = array<i32>} : memref<1x1x128xf32, #tpu.memory_space<vmem>>, vector<1x1x128xf32>,
    return
  }
  func.func @transform_0(%arg0: i32) -> (i32, i32) {
    %c0_i32 = arith.constant 0 : i32
    %c0_i32_0 = arith.constant 0 : i32
    return %arg0, %c0_i32 : i32, i32
  }
  func.func @transform_1(%arg0: i32) -> (i32, i32) {
    %c0_i32 = arith.constant 0 : i32
    %c0_i32_0 = arith.constant 0 : i32
    return %arg0, %c0_i32 : i32, i32
  }
  func.func @transform_2(%arg0: i32) -> (i32, i32, i32) {
    %c0_i32 = arith.constant 0 : i32
    %c0_i32_0 = arith.constant 0 : i32
    %c0_i32_1 = arith.constant 0 : i32
    return %arg0, %c0_i32, %c0_i32_0 : i32, i32, i32
  }
}

</mosaic_0001>

<bundles_post_ra>
// kernel: tpu_custom_call.1
= control target key start
LH: loop header
LB: loop body
LE: loop exit
PB: predicated region body
PF: predicated region fallthrough
CT: control target
= control target key end

     0   :  { %7 = vsyncpa [#allocation3], 0  ;;  %s541_s0 = inlined_call_operand.vmem [shape: f32[16,32], index: 0, kind: input, shape index: {}]   ;;  %s542_s1 = inlined_call_operand.vmem [shape: s32[16,1], index: 1, kind: input, shape index: {}]   ;;  %s543_s2 = inlined_call_operand.hbm [shape: f32[2,1,128], index: 2, kind: output, shape index: {}]  }
   0x1   :  { %9 = vsyncpa [#allocation3 + $0x1], 0  ;;  %s441_s9 = smov 0   ;;  %s443_s10 = smov 0  }
   0x2   :  { %s445_s11 = smov 0   ;;  %s447_s12 = smov 0  }
   0x3 LB: > { %s462_s13 = sadd.s32 4294967295, %s421_s12   ;;  %s300_s14 = sadd.s32 4294967294, %s421_s12   ;;  %s421_s12 = sphi %s447_s12, %s549_s12   ;;  %s417_s11 = sphi %s445_s11, %s548_s11   ;;  %s413_s10 = sphi %s443_s10, %s547_s10   ;;  %s409_s9 = sphi %s441_s9, %s546_s9  }
   0x4   : > { %s466_s15 = sadd.s32 1, %s421_s12   ;;  %s74_s16 = sadd.s32 1, %s417_s11 }
   0x5   : > { %s71_s17 = ssub.s32 %s421_s12, %s466_s15  ;;  %p84_p0 = scmp.ne.s32.totalorder %s417_s11, %s413_s10 }
   0x6   : > { %p72_p1 = scmp.eq.s32.totalorder %s71_s17, 0  ;;  %p85_p2 = scmp.eq.s32.totalorder %s462_s13, 1 }
   0x7   : > { %p90_p3 = scmp.ne.s32.totalorder %s413_s10, %s409_s9  ;;  %p91_p4 = scmp.eq.s32.totalorder %s300_s14, 1 }
   0x8   : > { %s477_s18 = scalar_select %p72_p1, %s417_s11, %s74_s16  }
   0x9   : > { %p479_p5 = por %p85_p2, %p84_p0  ;;  %p483_p6 = por %p91_p4, %p90_p3 }
   0xa   : > { %p303_p7 = scmp.ge.s32.totalorder %s421_s12, 1  ;;  %p123_p8 = scmp.lt.s32.totalorder %s421_s12, 3 }
   0xc   : > { %p124_p9 = pnand %p303_p7, %p123_p8 }
   0xd   : > { %p147_p10 = scmp.lt.s32.totalorder (!%p124_p9), %s462_s13, 1  ;;  %s306_s29 = sshll.u32 (!%p124_p9), %s462_s13, 3 }
   0xe   : > { %127 = sbr.rel (%p124_p9) target bundleno = 562 (0x232), region = 28  ;;  %s145_s30 = sand.u32 (!%p124_p9), 1, %s413_s10  }
   0xf   : > { %s308_s3 = sshll.u32 (!%p124_p9), %s462_s13, 4  ;;  %s146_s5 = scalar_lea.vmem (!%p124_p9), [#allocation2], %s145_s30 }
  0x10   : > { %s233_s6 = sshll.u32 (!%p124_p9), %s146_s5, 4  ;;  %s506_s16 = scalar_lea.hbm (!%p124_p9), %s543_s2, %s308_s3  ;;  %s234_s6 = int_to_ptr.vmem [resolvable:$true] %s233_s6 }
  0x11   : > { %s221_s17 = scalar_lea.sflag (!%p124_p9), [#allocation3], %s145_s30 }
  0x13   : > { %v423_v0 = vmov 0   ;;  %s148_s21 = scalar_select %p147_p10, %s462_s13, 1  ;;  %vm157_vm0 = vcmask 261120   ;;  %v161_v7 = vlaneseq  ;;  %v184_v16 = vstv %s306_s29 }
  0x14   : > { %356 = vset.pattern.permute.xlu0 %v423_v0  ;;  %vm193_vm5 = vcmask 7168   ;;  %v424_v24 = vmov 0.0   ;;  %s361_s13 = scalar_lea.vmem %s234_s6, 16 }
  0x15   : > { %s304_s22 = sshll.u32 %s148_s21, 3  ;;  %v162_v8 = vand.u32 127, %v161_v7  ;;  %v182_v15 = vshrl.u32 %v161_v7, 7  ;;  %p362_p11 = scmp.ne.s32.totalorder %s234_s6, %s361_s13 }
  0x16   : > { %s150_s25 = scalar_lea.vmem %s541_s0, %s304_s22  ;;  %s154_s28 = scalar_lea.vmem %s542_s1, %s304_s22 }
  0x17   : > { %v155_v1 = vld [vmem:[%s150_s25] sm:$0xff]  ;;  %v185_v17 = vadd.s32 %v184_v16, %v182_v15  ;;  %vm204_vm6 = vcmp.eq.s32.totalorder %v162_v8, 1  ;;  %vm192_vm7 = vcmp.eq.s32.totalorder %v162_v8, 0  ;;  %p363_p12 = pnand %p362_p11, %p479_p5  ;;  %s425_s21 = smov [#allocation2]  }
  0x18   : > { %v158_v2 = vsel %vm157_vm0, %v155_v1, -inf  ;;  %v156_v3 = vld [vmem:[%s154_s28] sm:$0xff]  ;;  %s365_s22 = sshll.u32 %s425_s21, 4  ;;  %s366_s22 = int_to_ptr.vmem [resolvable:$false] %s365_s22 }
  0x19   : > { %159 = vmax.xlane.f32.xlu0 %v158_v2  ;;  %vm187_vm2 = vcmp.ne.s32.totalorder %v156_v3, 1  ;;  %vm186_vm3 = vcmp.lt.s32.totalorder %v185_v17, 16  ;;  %p364_p13 = pneg %p363_p12  ;;  %s367_s23 = scalar_lea.vmem %s366_s22, 32 }
  0x1a   : > { %vm188_vm4 = vmand %vm186_vm3, %vm187_vm2  ;;  %p368_p0 = scmp.lt.s32.totalorder %s234_s6, %s366_s22  ;;  %p369_p1 = scmp.lt.s32.totalorder %s367_s23, %s361_s13 }
  0x1b   : > { %v307_v25 = vsel %vm188_vm4, 1.0, %v424_v24 }
  0x1c   : > { %v205_v27 = vsel %vm193_vm5, %v307_v25, 0.0  ;;  %p370_p2 = por %p369_p1, %p368_p0 }
  0x1e   : > { %p371_p3 = pnand %p370_p2, %p364_p13 }
  0x2f   : > { %164 = vperm.xlu0 %356, %v156_v3  }
  0xa2   : > { %v160_v4 = vpop.xlane.xlu0 %159 }
  0xa3   : > { %v171_v5 = vsub.f32 %v155_v1, %v160_v4 }
  0xa5   : > { %v172_v6 = vmul.f32 1.442695, %v171_v5 }
  0xa7   : > { %357 = vpow2.f32 %v172_v6 }
  0xaa   : > { %v165_v9 = vpop.permute.xlu0 %164 }
  0xab   : > { %vm166_vm1 = vcmp.eq.s32.totalorder %v162_v8, %v165_v9 }
  0xac   : > { %v167_v11 = vsel %vm166_vm1, %v155_v1, 0.0 }
  0xad   : > { %v168_v13 = vsel %vm157_vm0, %v167_v11, 0.0 }
  0xb4   : > { %v358_v10 = vpop.eup %357 }
  0xb5   : > { %v174_v12 = vsel %vm157_vm0, %v358_v10, 0.0 }
  0xb6   : > { %175 = vadd.xlane.f32.xlu1 %v174_v12 }
  0xba   : > { %169 = vadd.xlane.f32.xlu1 %v168_v13 }
 0x13f   : > { %v176_v14 = vpop.xlane.xlu1 %175 }
 0x140   : > { %359 = vlog2.f32 %v176_v14 }
 0x143   : > { %v170_v20 = vpop.xlane.xlu1 %169 }
 0x14d   : > { %v360_v18 = vpop.eup %359 }
 0x14e   : > { %v178_v19 = vmul.f32 0.6931472, %v360_v18 }
 0x150   : > { %v179_v21 = vadd.f32 %v178_v19, %v160_v4 }
 0x152   : > { %v180_v22 = vsub.f32 %v179_v21, %v170_v20 }
 0x154   : > { %v191_v23 = vsel %vm188_vm4, %v180_v22, 0.0 }
 0x155   : > { %v194_v26 = vsel %vm193_vm5, %v191_v23, 0.0 }
 0x156   : > { %195 = vadd.xlane.f32.xlu1 %v194_v26 }
 0x15a   : > { %206 = vadd.xlane.f32.xlu1 %v205_v27 }
 0x1df   : > { %v196_v28 = vpop.xlane.xlu1 %195 }
 0x1e0   : > { %v197_v29 = vrot.slane %v196_v28, 4 }
 0x1e2   : > { %v198_v30 = vadd.f32 %v197_v29, %v196_v28 }
 0x1e3   : > { %v207_v31 = vpop.xlane.xlu1 %206 }
 0x1e4   : > { %v199_v32 = vrot.slane %v198_v30, 2  ;;  %v208_v33 = vrot.slane %v207_v31, 4 }
 0x1e6   : > { %v209_v34 = vadd.f32 %v208_v33, %v207_v31  ;;  %v200_v35 = vadd.f32 %v199_v32, %v198_v30 }
 0x1e8   : > { %v210_v36 = vrot.slane %v209_v34, 2  ;;  %v201_v37 = vrot.slane %v200_v35, 1 }
 0x1ea   : > { %v211_v38 = vadd.f32 %v210_v36, %v209_v34  ;;  %v202_v39 = vadd.f32 %v201_v37, %v200_v35 }
 0x1ec   : > { %311 = vpush %v202_v39  ;;  %v212_v40 = vrot.slane %v211_v38, 1 }
 0x1ee   : > { %v213_v41 = vadd.f32 %v212_v40, %v211_v38 }
 0x1f0   : > { %313 = vpush %v213_v41 }
 0x21d   : > { %s312_s4 = spop %311 }
 0x21e   : > { %v217_v43 = vstv %s312_s4 }
 0x221   : > { %s314_s7 = spop %313 }
 0x222   : > { %v215_v42 = vstv %s314_s7 }
 0x223   : > { %v216_v44 = vsel %vm204_vm6, %v215_v42, 0.0 }
 0x224   : > { %v218_v45 = vsel %vm192_vm7, %v217_v43, %v216_v44 }
 0x225   : > { %219 = vst [vmem:[%s146_s5] sm:$0x1] %v218_v45 }
 0x226   : > { %374 = shalt.err (!%p371_p3)
}
 0x227   : > { %s375_s24 = scalar_lea.hbm %s506_s16, 16  ;;  %s379_s27 = scalar_lea.hbm %s543_s2, 32 }
 0x228   : > { %p376_p4 = scmp.ne.s32.totalorder %s506_s16, %s375_s24  ;;  %p380_p9 = scmp.lt.s32.totalorder %s506_s16, %s543_s2 }
 0x229   : > { %p381_p10 = scmp.lt.s32.totalorder %s379_s27, %s375_s24 }
 0x22a   : > { %p377_p7 = pnand %p376_p4, %p479_p5 }
 0x22b   : > { %p382_p11 = por %p381_p10, %p380_p9 }
 0x22c   : > { %p378_p8 = pneg %p377_p7 }
 0x22e   : > { %p383_p12 = pnand %p382_p11, %p378_p8 }
 0x230   : > { %386 = shalt.err (!%p383_p12)
}
 0x231   : > { %315 = dma.vmem_to_hbm [thread:$0]  (%p479_p5), %s234_s6, 16, %s506_s16, %s221_s17  }
 0x232 PF: > { %p321_p13 = scmp.ge.s32.totalorder %s421_s12, 2  ;;  %s245_s30 = sand.u32 1, %s409_s9  }
 0x233   : > { %s246_s3 = scalar_lea.sflag [#allocation3], %s245_s30 }
 0x234   : > { %p318_p0 = pnand %p321_p13, %p483_p6 }
 0x236   : > { %p319_p1 = pneg %p318_p0 }
 0x238   : > { %404 = dma.done.wait (%p319_p1), %s246_s3, 16  }
 0x239   : > { %406 = vsyncadd (%p319_p1), %s246_s3, 4294967280  ;;  %p12_p2 = scmp.ge.s32.totalorder %s466_s15, 4   ;;  %s546_s9 = smov %s413_s10 }
 0x23a   : > { %s547_s10 = smov %s417_s11  ;;  %s548_s11 = smov %s477_s18 }
 0x23b   : > { %s549_s12 = smov %s466_s15  ;;  %14 = sbr.rel (!%p12_p2) target bundleno = 3 (0x3), region = 66 }
 0x240   :  { %250 = vsyncpa [#allocation3], 1 }
 0x241   :  { %252 = vsyncpa [#allocation3 + $0x1], 1 }

</bundles_post_ra>
